<compile_context>
chip_gen: v6e
topology: v6e:2x2x1
jax: 0.10.0
libtpu: 0.0.40
codegen_flags: <defaults>
</compile_context>

<pallas_src>
import functools

import jax
import jax.numpy as jnp
from jax.experimental import pallas as pl
from jax.experimental.pallas import tpu as pltpu

_LANE = 128
_VMEM_LIMIT = 32 * 1024 * 1024          # safe on v5e/v6e/v7x
_DEFAULT_BLOCK_BYTES = 2 * 1024 * 1024  # per-block budget (keeps 2x-in + 2x-out buffers small)


# ----------------------------- kernels --------------------------------------


def _fused_kernel(x_ref, w1t_ref, w2t_ref, y_ref, *, hw):
    """One (1, C, HW) slice per grid step: pool -> MLP -> sigmoid -> scale."""
    xsum = jnp.sum(x_ref[...], axis=-1)                       # (1, C)
    xmax = jnp.max(x_ref[...], axis=-1)                       # (1, C)
    avg = xsum * (1.0 / hw)
    p = jnp.concatenate([avg, xmax], axis=0)                  # (2, C): fused avg/max branches
    h = jnp.maximum(jnp.dot(p, w1t_ref[...], preferred_element_type=jnp.float32), 0.0)
    a = jnp.dot(h, w2t_ref[...], preferred_element_type=jnp.float32)  # (2, C)
    gate = jax.nn.sigmoid(a[0:1] + a[1:2])                    # (1, C)
    # Re-read x from the ref for the scale (don't keep a big value live).
    y_ref[...] = x_ref[...] * gate[:, :, None]


def _reduce_gate_kernel(x_ref, w1t_ref, w2t_ref, att_ref, sum_sc, max_sc, *, hw, thw):
    """Phase 1: accumulate per-(n,C) sum/max over spatial tiles; emit gate at last tile."""
    k = pl.program_id(1)

    @pl.when(k == 0)
    def _():
        sum_sc[...] = jnp.zeros_like(sum_sc)
        max_sc[...] = jnp.full_like(max_sc, -jnp.inf)

    if hw % thw != 0:
        # Edge tile: mask padded lanes (0 for the sum, -inf for the max).
        lane = jax.lax.broadcasted_iota(jnp.int32, x_ref.shape, dimension=2)
        valid = (k * thw + lane) < hw
        sum_sc[...] += jnp.sum(jnp.where(valid, x_ref[...], 0.0), axis=-1)
        max_sc[...] = jnp.maximum(
            max_sc[...], jnp.max(jnp.where(valid, x_ref[...], -jnp.inf), axis=-1)
        )
    else:
        sum_sc[...] += jnp.sum(x_ref[...], axis=-1)
        max_sc[...] = jnp.maximum(max_sc[...], jnp.max(x_ref[...], axis=-1))

    @pl.when(k == pl.num_programs(1) - 1)
    def _():
        avg = sum_sc[...] * (1.0 / hw)                        # (1, C)
        p = jnp.concatenate([avg, max_sc[...]], axis=0)       # (2, C)
        h = jnp.maximum(jnp.dot(p, w1t_ref[...], preferred_element_type=jnp.float32), 0.0)
        a = jnp.dot(h, w2t_ref[...], preferred_element_type=jnp.float32)
        att_ref[...] = jax.nn.sigmoid(a[0:1] + a[1:2])[:, :, None]   # (1, C, 1)


def _scale_kernel(x_ref, att_ref, y_ref):
    """Phase 2: broadcast the per-(n,C) gate over the spatial tile."""
    y_ref[...] = x_ref[...] * att_ref[...]


# ----------------------------- wrappers --------------------------------------


def _reference_level(x, w1, w2):
    """Pure-JAX reference matching the PyTorch module (also the tiny-level path)."""
    avg = jnp.mean(x, axis=(2, 3))  # (N, C)
    mx = jnp.max(x, axis=(2, 3))    # (N, C)

    def mlp(p):
        return jnp.maximum(p @ w1.T, 0.0) @ w2.T

    att = jax.nn.sigmoid(mlp(avg) + mlp(mx))
    return x * att[:, :, None, None]


def _round_down_to_lane(v):
    return max(_LANE, (v // _LANE) * _LANE)


@functools.partial(jax.jit, static_argnames=("max_block_bytes",))
def channel_attention_level(x_nchw, w1, w2, *, max_block_bytes=_DEFAULT_BLOCK_BYTES):
    """Channel attention for one feature level.

    x_nchw: (N, C, H, W) float32
    w1:     (C_red, C)  == fc1.weight[:, :, 0, 0]
    w2:     (C, C_red)  == fc2.weight[:, :, 0, 0]
    """
    N, C, H, W = x_nchw.shape
    HW = H * W

    # Tiny pyramid levels: lane-starved + dispatch overhead dominates -> plain JAX.
    if HW < _LANE:
        return _reference_level(x_nchw, w1, w2)

    x = x_nchw.reshape(N, C, HW)
    w1t = w1.T  # (C, Cr)
    w2t = w2.T  # (Cr, C)
    bytes_per_slice = C * HW * x.dtype.itemsize

    if bytes_per_slice <= max_block_bytes:
        # Fused single-pass path: grid over N, pipelined + megacore-parallel.
        y = pl.pallas_call(
            functools.partial(_fused_kernel, hw=HW),
            out_shape=jax.ShapeDtypeStruct((N, C, HW), x.dtype),
            grid=(N,),
            in_specs=[
                pl.BlockSpec((1, C, HW), lambda n: (n, 0, 0)),
                pl.BlockSpec(w1t.shape, lambda n: (0, 0)),
                pl.BlockSpec(w2t.shape, lambda n: (0, 0)),
            ],
            out_specs=pl.BlockSpec((1, C, HW), lambda n: (n, 0, 0)),
            compiler_params=pltpu.CompilerParams(
                dimension_semantics=("parallel",),
                vmem_limit_bytes=_VMEM_LIMIT,
            ),
        )(x, w1t, w2t)
        return y.reshape(N, C, H, W)

    # Large level: two-phase reduce-then-scale with lane-aligned spatial tiles.
    thw = _round_down_to_lane(max_block_bytes // (C * x.dtype.itemsize))
    K = pl.cdiv(HW, thw)

    att = pl.pallas_call(
        functools.partial(_reduce_gate_kernel, hw=HW, thw=thw),
        out_shape=jax.ShapeDtypeStruct((N, C, 1), jnp.float32),
        grid=(N, K),
        in_specs=[
            pl.BlockSpec((1, C, thw), lambda n, k: (n, 0, k)),
            pl.BlockSpec(w1t.shape, lambda n, k: (0, 0)),
            pl.BlockSpec(w2t.shape, lambda n, k: (0, 0)),
        ],
        out_specs=pl.BlockSpec((1, C, 1), lambda n, k: (n, 0, 0)),
        scratch_shapes=[
            pltpu.VMEM((1, C), jnp.float32),
            pltpu.VMEM((1, C), jnp.float32),
        ],
        compiler_params=pltpu.CompilerParams(
            dimension_semantics=("parallel", "arbitrary"),
            vmem_limit_bytes=_VMEM_LIMIT,
        ),
    )(x, w1t, w2t)

    y = pl.pallas_call(
        _scale_kernel,
        out_shape=jax.ShapeDtypeStruct((N, C, HW), x.dtype),
        grid=(N, K),
        in_specs=[
            pl.BlockSpec((1, C, thw), lambda n, k: (n, 0, k)),
            pl.BlockSpec((1, C, 1), lambda n, k: (n, 0, 0)),
        ],
        out_specs=pl.BlockSpec((1, C, thw), lambda n, k: (n, 0, k)),
        compiler_params=pltpu.CompilerParams(
            dimension_semantics=("parallel", "parallel"),
            vmem_limit_bytes=_VMEM_LIMIT,
        ),
    )(x, att)
    return y.reshape(N, C, H, W)


def channel_attention_forward(xs, w1, w2, *, max_block_bytes=_DEFAULT_BLOCK_BYTES):
    """Forward over a list of feature maps (like the mmdet NECK)."""
    return [
        channel_attention_level(x, w1, w2, max_block_bytes=max_block_bytes) for x in xs
    ]


# ----------------------------- demo / check ----------------------------------


if __name__ == "__main__":
    key = jax.random.PRNGKey(0)
    k_x0, k_x1, k_x2, k_w1, k_w2 = jax.random.split(key, 5)

    # Module config: in_channels=32, reduction=4 -> hidden = 8
    N, C, RED = 2, 32, 4
    CR = C // RED

    # Feature pyramid: three levels exercising all three code paths.
    x0 = jax.random.normal(k_x0, (N, C, 16, 16), dtype=jnp.float32)  # fused single-pass
    x1 = jax.random.normal(k_x1, (N, C, 20, 20), dtype=jnp.float32)  # two-pass (forced below)
    x2 = jax.random.normal(k_x2, (N, C, 8, 8), dtype=jnp.float32)    # tiny -> JAX fallback

    # Deterministic 1x1-conv weights (bias=False in the module).
    w1 = 0.1 * jax.random.normal(k_w1, (CR, C), dtype=jnp.float32)  # fc1.weight[:, :, 0, 0]
    w2 = 0.1 * jax.random.normal(k_w2, (C, CR), dtype=jnp.float32)  # fc2.weight[:, :, 0, 0]

    # Per-level check; x1 uses a tiny block budget to exercise the tiled
    # reduce-then-scale path (incl. edge-tile lane masking: 400 = 256 + 144).
    levels = [(x0, _DEFAULT_BLOCK_BYTES), (x1, 32 * 1024), (x2, _DEFAULT_BLOCK_BYTES)]
    for x, budget in levels:
        out = channel_attention_level(x, w1, w2, max_block_bytes=budget)
        out = jax.block_until_ready(out)
        ref = _reference_level(x, w1, w2)
        assert out.shape == x.shape and out.dtype == x.dtype
        assert float(jnp.max(jnp.abs(out - ref))) < 1e-5

    # Multi-level API (default budgets), like the PyTorch forward over a tuple.
    outs = channel_attention_forward([x0, x1, x2], w1, w2)
    outs = [jax.block_until_ready(o) for o in outs]
    for x, o in zip([x0, x1, x2], outs):
        ref = _reference_level(x, w1, w2)
        assert float(jnp.max(jnp.abs(o - ref))) < 1e-5

    print("KERNEL_OK")
</pallas_src>

<mosaic_0001>
module attributes {stable_mosaic.version = 11 : i64} {
  func.func @_fused_kernel(%arg0: i32, %arg1: memref<1x32x256xf32, #tpu.memory_space<vmem>>, %arg2: memref<32x8xf32, #tpu.memory_space<vmem>>, %arg3: memref<8x32xf32, #tpu.memory_space<vmem>>, %arg4: memref<1x32x256xf32, #tpu.memory_space<vmem>>) attributes {dimension_semantics = [#tpu.dimension_semantics<parallel>], iteration_bounds = array<i64: 2>, scalar_prefetch = 0 : i64, scratch_operands = 0 : i64, tpu.core_type = #tpu.core_type<tc>, window_params = [{transform_indices = @transform_0, window_bounds = array<i64: 1, 32, 256>}, {pipeline_mode = #tpu.pipeline_mode<synchronous>, transform_indices = @transform_1, window_bounds = array<i64: 32, 8>}, {pipeline_mode = #tpu.pipeline_mode<synchronous>, transform_indices = @transform_2, window_bounds = array<i64: 8, 32>}, {transform_indices = @transform_3, window_bounds = array<i64: 1, 32, 256>}]} {
    %c0 = arith.constant 0 : index
    %c0_0 = arith.constant 0 : index
    %c0_1 = arith.constant 0 : index
    %0 = vector.load %arg1[%c0, %c0_0, %c0_1] : memref<1x32x256xf32, #tpu.memory_space<vmem>>, vector<1x32x256xf32>
    %cst = arith.constant dense<0.000000e+00> : vector<1x32xf32>
    %1 = vector.multi_reduction <add>, %0, %cst [2] : vector<1x32x256xf32> to vector<1x32xf32>
    %c0_2 = arith.constant 0 : index
    %c0_3 = arith.constant 0 : index
    %c0_4 = arith.constant 0 : index
    %2 = vector.load %arg1[%c0_2, %c0_3, %c0_4] : memref<1x32x256xf32, #tpu.memory_space<vmem>>, vector<1x32x256xf32>
    %cst_5 = arith.constant dense<0xFF800000> : vector<1x32xf32>
    %3 = vector.multi_reduction <maximumf>, %2, %cst_5 [2] : vector<1x32x256xf32> to vector<1x32xf32>
    %cst_6 = arith.constant 3.906250e-03 : f32
    %4 = vector.broadcast %cst_6 : f32 to vector<1x32xf32>
    %5 = arith.mulf %1, %4 : vector<1x32xf32>
    %6 = tpu.concatenate %5, %3 in 0 : vector<1x32xf32>, vector<1x32xf32> -> vector<2x32xf32>
    %c0_7 = arith.constant 0 : index
    %c0_8 = arith.constant 0 : index
    %7 = vector.load %arg2[%c0_7, %c0_8] : memref<32x8xf32, #tpu.memory_space<vmem>>, vector<32x8xf32>
    %cst_9 = arith.constant dense<0.000000e+00> : vector<2x8xf32>
    %8 = tpu.matmul %6, %7, %cst_9 {dimension_numbers = #tpu.dot_dimension_numbers<[1], [0], [0], [1], [0, 0, 1, 1], [], []>} : vector<2x32xf32>, vector<32x8xf32>, vector<2x8xf32> -> vector<2x8xf32>
    %cst_10 = arith.constant 0.000000e+00 : f32
    %9 = vector.broadcast %cst_10 : f32 to vector<2x8xf32>
    %10 = arith.maximumf %8, %9 : vector<2x8xf32>
    %c0_11 = arith.constant 0 : index
    %c0_12 = arith.constant 0 : index
    %11 = vector.load %arg3[%c0_11, %c0_12] : memref<8x32xf32, #tpu.memory_space<vmem>>, vector<8x32xf32>
    %cst_13 = arith.constant dense<0.000000e+00> : vector<2x32xf32>
    %12 = tpu.matmul %10, %11, %cst_13 {dimension_numbers = #tpu.dot_dimension_numbers<[1], [0], [0], [1], [0, 0, 1, 1], [], []>} : vector<2x8xf32>, vector<8x32xf32>, vector<2x32xf32> -> vector<2x32xf32>
    %13 = vector.extract_strided_slice %12 {offsets = [0, 0], sizes = [1, 32], strides = [1, 1]} : vector<2x32xf32> to vector<1x32xf32>
    %14 = vector.extract_strided_slice %12 {offsets = [1, 0], sizes = [1, 32], strides = [1, 1]} : vector<2x32xf32> to vector<1x32xf32>
    %15 = arith.addf %13, %14 : vector<1x32xf32>
    %16 = arith.negf %15 : vector<1x32xf32>
    %17 = math.exp %16 : vector<1x32xf32>
    %cst_14 = arith.constant 1.000000e+00 : f32
    %18 = vector.broadcast %cst_14 : f32 to vector<1x32xf32>
    %19 = arith.addf %18, %17 : vector<1x32xf32>
    %20 = arith.divf %18, %19 : vector<1x32xf32>
    %c0_15 = arith.constant 0 : index
    %c0_16 = arith.constant 0 : index
    %c0_17 = arith.constant 0 : index
    %21 = vector.load %arg1[%c0_15, %c0_16, %c0_17] : memref<1x32x256xf32, #tpu.memory_space<vmem>>, vector<1x32x256xf32>
    %22 = vector.shape_cast %20 : vector<1x32xf32> to vector<1x32x1xf32>
    %23 = vector.broadcast %22 : vector<1x32x1xf32> to vector<1x32x256xf32>
    %24 = arith.mulf %21, %23 : vector<1x32x256xf32>
    %c0_18 = arith.constant 0 : index
    %c0_19 = arith.constant 0 : index
    %c0_20 = arith.constant 0 : index
    %25 = vector.load %arg4[%c0_18, %c0_19, %c0_20] : memref<1x32x256xf32, #tpu.memory_space<vmem>>, vector<1x32x256xf32>
    tpu.vector_store %arg4[%c0_18, %c0_19, %c0_20], %24 {strides = array<i32>} : memref<1x32x256xf32, #tpu.memory_space<vmem>>, vector<1x32x256xf32>,
    return
  }
  func.func @transform_0(%arg0: i32) -> (i32, i32, i32) {
    %c0_i32 = arith.constant 0 : i32
    %c0_i32_0 = arith.constant 0 : i32
    %c0_i32_1 = arith.constant 0 : i32
    return %arg0, %c0_i32, %c0_i32_0 : i32, i32, i32
  }
  func.func @transform_1(%arg0: i32) -> (i32, i32) {
    %c0_i32 = arith.constant 0 : i32
    %c0_i32_0 = arith.constant 0 : i32
    %c0_i32_1 = arith.constant 0 : i32
    return %c0_i32, %c0_i32_0 : i32, i32
  }
  func.func @transform_2(%arg0: i32) -> (i32, i32) {
    %c0_i32 = arith.constant 0 : i32
    %c0_i32_0 = arith.constant 0 : i32
    %c0_i32_1 = arith.constant 0 : i32
    return %c0_i32, %c0_i32_0 : i32, i32
  }
  func.func @transform_3(%arg0: i32) -> (i32, i32, i32) {
    %c0_i32 = arith.constant 0 : i32
    %c0_i32_0 = arith.constant 0 : i32
    %c0_i32_1 = arith.constant 0 : i32
    return %arg0, %c0_i32, %c0_i32_0 : i32, i32, i32
  }
}

</mosaic_0001>

<bundles_post_ra>
// kernel: channel_attention_level.1
= control target key start
LH: loop header
LB: loop body
LE: loop exit
PB: predicated region body
PF: predicated region fallthrough
CT: control target
= control target key end

     0   :  { %s602_s12 = smov 0   ;;  %s683_s0 = inlined_call_operand.vmem [shape: f32[2,32,256], index: 0, kind: input, shape index: {}]   ;;  %s684_s1 = inlined_call_operand.vmem [shape: f32[32,8], index: 1, kind: input, shape index: {}]   ;;  %s685_s2 = inlined_call_operand.vmem [shape: f32[8,32], index: 2, kind: input, shape index: {}]   ;;  %s686_s3 = inlined_call_operand.vmem [shape: f32[2,32,256], index: 3, kind: output, shape index: {}]  }
   0x1 LB: > { %s519_s13 = sadd.s32 4294967295, %s578_s12   ;;  %p523_p0 = scmp.ge.s32.totalorder %s578_s12, 1  ;;  %s578_s12 = sphi %s602_s12, %s13_s12  }
   0x2   : > { %p137_p1 = scmp.lt.s32.totalorder %s578_s12, 3 }
   0x4   : > { %p138_p2 = pnand %p523_p0, %p137_p1 }
   0x5   : > { %p161_p3 = scmp.lt.s32.totalorder (!%p138_p2), %s519_s13, 1 }
   0x6   : > { %141 = sbr.rel (%p138_p2) target bundleno = 725 (0x2d5), region = 32 }
   0xb   : > { %s688_s13 = smov (!%p161_p3, %s519_s13), 1  ;;  %v580_v16 = vmov 0.0   ;;  %v268_v17 = vld [vmem:[%s684_s1 + $0x18] sm:$0xff]  ;;  %v267_v18 = vld [vmem:[%s684_s1 + $0x10] sm:$0xff]  ;;  %v266_v19 = vld [vmem:[%s684_s1 + $0x8] sm:$0xff]  ;;  %vm581_vm0 = vmmov 0   ;;  %v211_v21 = vlaneseq }
   0xc   : > { %s533_s14 = sshll.u32 %s688_s13, 6  ;;  %542 = vmatprep.subr.mxu0 %v580_v16  ;;  %553 = vmatprep.subr.mxu1 %v580_v16  ;;  %v265_v20 = vld [vmem:[%s684_s1] sm:$0xff]  ;;  %vm222_vm1 = vcmask 130112   ;;  %vm229_vm2 = vcmask 195712   ;;  %vm236_vm3 = vcmask 261312   ;;  %vm263_vm4 = vcmask 1040384  }
   0xd   : > { %s165_s17 = scalar_lea.vmem %s683_s0, %s533_s14  ;;  %543 = vmatpush3.msra.mxu0 %v268_v17  ;;  %550 = vmatprep.mubr.msk.f32.mxu0 %vm581_vm0, %v580_v16  ;;  %v212_v22 = vand.u32 127, %v211_v21  ;;  %v214_v25 = vshrl.u32 %v211_v21, 7  ;;  %vm269_vm5 = vcmask 261120   ;;  %v344_v58 = vld [vmem:[%s685_s2] sm:$0xff]  ;;  %vm345_vm6 = vcmask 64512   ;;  %s170_s30 = scalar_lea.vmem %s686_s3, %s533_s14 }
   0xe   : > { %v618_v0 = vld [vmem:[%s165_s17 + $0x20] sm:$0xff]  ;;  %v620_v1 = vld [vmem:[%s165_s17 + $0x28] sm:$0xff]  ;;  %v628_v5 = vld [vmem:[%s165_s17 + $0x30] sm:$0xff]  ;;  %544 = vmatprep.subr.mxu0 %v580_v16  ;;  %555 = vmatprep.mubr.msk.f32.mxu1 %vm581_vm0, %v580_v16 }
   0xf   : > { %v622_v2 = vld [vmem:[%s165_s17] sm:$0xff]  ;;  %v185_v3 = vadd.f32 %v620_v1, %v618_v0  ;;  %v626_v4 = vld [vmem:[%s165_s17 + $0x8] sm:$0xff]  ;;  %v630_v6 = vld [vmem:[%s165_s17 + $0x38] sm:$0xff]  ;;  %v197_v15 = vmax.f32 %v618_v0, %v620_v1  ;;  %545 = vmatpush3.msra.mxu0 %v267_v18  ;;  %v217_v24 = vadd.s32 4294967288, %v212_v22  ;;  %v224_v27 = vadd.s32 4294967280, %v212_v22  ;;  %554 = vmatpush3.msra.mxu1 %v344_v58 }
  0x10   : > { %v179_v7 = vadd.f32 %v626_v4, %v622_v2  ;;  %v634_v8 = vld [vmem:[%s165_s17 + $0x10] sm:$0xff]  ;;  %v636_v9 = vld [vmem:[%s165_s17 + $0x18] sm:$0xff]  ;;  %v188_v10 = vadd.f32 %v630_v6, %v628_v5  ;;  %v191_v13 = vmax.f32 %v622_v2, %v626_v4  ;;  %v200_v14 = vmax.f32 %v628_v5, %v630_v6  ;;  %546 = vmatprep.subr.mxu0 %v580_v16 }
  0x11   : > { %186 = vadd.xlane.f32.xlu1 %v185_v3  ;;  %v182_v11 = vadd.f32 %v636_v9, %v634_v8  ;;  %v194_v12 = vmax.f32 %v634_v8, %v636_v9  ;;  %547 = vmatpush3.msra.mxu0 %v266_v19  ;;  %v220_v29 = vsub.s32 %v217_v24, %v214_v25  ;;  %v231_v32 = vadd.s32 4294967272, %v212_v22 }
  0x12   : > { %180 = vadd.xlane.f32.xlu0 %v179_v7  ;;  %548 = vmatprep.subr.mxu0 %v580_v16  ;;  %v215_v30 = vsub.s32 %v212_v22, %v214_v25  ;;  %v227_v35 = vsub.s32 %v224_v27, %v214_v25 }
  0x13   : > { %549 = vmatpush3.msra.mxu0 %v265_v20  ;;  %v234_v40 = vsub.s32 %v231_v32, %v214_v25 }
  0x15   : > { %189 = vadd.xlane.f32.xlu1 %v188_v10 }
  0x16   : > { %183 = vadd.xlane.f32.xlu0 %v182_v11 }
  0x19   : > { %195 = vmax.xlane.f32.xlu1 %v194_v12 }
  0x1a   : > { %192 = vmax.xlane.f32.xlu0 %v191_v13  ;;  %v431_v13 = vsub.s32 0, %v214_v25 }
  0x1d   : > { %201 = vmax.xlane.f32.xlu1 %v200_v14 }
  0x1e   : > { %198 = vmax.xlane.f32.xlu0 %v197_v15 }
  0x9a   : > { %v187_v23 = vpop.xlane.xlu1 %186 }
  0x9b   : > { %v181_v26 = vpop.xlane.xlu0 %180  ;;  %v205_v36 = vmul.f32 0.00390625, %v187_v23 }
  0x9c   : > { %v203_v31 = vmul.f32 0.00390625, %v181_v26 }
  0x9d   : > { %v228_v46 = vrot.slane %v205_v36, %v227_v35 }
  0x9e   : > { %v190_v28 = vpop.xlane.xlu1 %189  ;;  %v216_v39 = vrot.slane %v203_v31, %v215_v30 }
  0x9f   : > { %v184_v33 = vpop.xlane.xlu0 %183  ;;  %v206_v41 = vmul.f32 0.00390625, %v190_v28 }
  0xa0   : > { %v204_v34 = vmul.f32 0.00390625, %v184_v33 }
  0xa1   : > { %v235_v48 = vrot.slane %v206_v41, %v234_v40 }
  0xa2   : > { %v221_v37 = vrot.slane %v204_v34, %v220_v29  ;;  %v196_v38 = vpop.xlane.xlu1 %195 }
  0xa3   : > { %v193_v42 = vpop.xlane.xlu0 %192  ;;  %v250_v44 = vrot.slane %v196_v38, %v220_v29 }
  0xa4   : > { %v223_v43 = vsel %vm222_vm1, %v221_v37, %v216_v39  ;;  %v246_v45 = vrot.slane %v193_v42, %v215_v30 }
  0xa5   : > { %v230_v52 = vsel %vm229_vm2, %v228_v46, %v223_v43 }
  0xa6   : > { %v202_v47 = vpop.xlane.xlu1 %201  ;;  %v251_v53 = vsel %vm222_vm1, %v250_v44, %v246_v45  ;;  %v237_v56 = vsel %vm236_vm3, %v235_v48, %v230_v52 }
  0xa7   : > { %v199_v49 = vpop.xlane.xlu0 %198  ;;  %v260_v50 = vrot.slane %v202_v47, %v234_v40 }
  0xa8   : > { %v255_v51 = vrot.slane %v199_v49, %v227_v35 }
  0xaa   : > { %v256_v54 = vsel %vm229_vm2, %v255_v51, %v251_v53 }
  0xab   : > { %v261_v55 = vsel %vm236_vm3, %v260_v50, %v256_v54 }
  0xac   : > { %v264_v57 = vsel %vm263_vm4, %v237_v56, %v261_v55 }
  0xad   : > { %551 = vmatmul.mubr.msk.f32.vlgmr.msra.gmra.mxu0 %vm269_vm5, %v264_v57 }
 0x16d   : > { %v339_v59 = vpop.f32.mrf.mxu0 }
 0x16e   : > { %v343_v60 = vmax.f32 %v339_v59, 0.0 }
 0x16f   : > { %v552_v61 = vpop.f32.mrf.mxu0 }
 0x170   : > { %556 = vmatmul.mubr.msk.f32.vlgmr.msra.gmra.mxu1 %vm345_vm6, %v343_v60 }
 0x230   : > { %v415_v62 = vpop.f32.mrf.mxu1 }
 0x231   : > { %v420_v63 = vrot.slane %v415_v62, 1 }
 0x232   : > { %v557_v3 = vpop.f32.mrf.mxu1 }
 0x233   : > { %v422_v7 = vadd.f32 %v420_v63, %v415_v62 }
 0x235   : > { %v530_v10 = vmul.f32 -1.442695, %v422_v7 }
 0x237   : > { %568 = vpow2.f32 %v530_v10 }
 0x244   : > { %v569_v11 = vpop.eup %568 }
 0x245   : > { %v426_v12 = vadd.f32 1.0, %v569_v11 }
 0x247   : > { %570 = vrcp.f32 %v426_v12 }
 0x254   : > { %v571_v14 = vpop.eup %570 }
 0x255   : > { %v432_v15 = vrot.slane %v571_v14, %v431_v13 }
 0x257   : > { %438 = vbcast.lane.b32.xlu1 %v432_v15, 264  ;;  %434 = vbcast.lane.b32.xlu0 %v432_v15, 256 }
 0x25b   : > { %442 = vbcast.lane.b32.xlu1 %v432_v15, 272 }
 0x25f   : > { %446 = vbcast.lane.b32.xlu1 %v432_v15, 280 }
 0x2c9   : > { %v439_v16 = vpop.permute.xlu1 %438  ;;  %v435_v17 = vpop.permute.xlu0 %434 }
 0x2ca   : > { %v450_v18 = vmul.f32 %v439_v16, %v634_v8  ;;  %v451_v19 = vmul.f32 %v439_v16, %v636_v9  ;;  %v448_v20 = vmul.f32 %v435_v17, %v622_v2  ;;  %v449_v21 = vmul.f32 %v435_v17, %v626_v4 }
 0x2cc   : > { %458 = vst [vmem:[%s170_s30 + $0x10] sm:$0xff] %v450_v18  ;;  %459 = vst [vmem:[%s170_s30 + $0x18] sm:$0xff] %v451_v19 }
 0x2cd   : > { %456 = vst [vmem:[%s170_s30] sm:$0xff] %v448_v20  ;;  %457 = vst [vmem:[%s170_s30 + $0x8] sm:$0xff] %v449_v21  ;;  %v443_v22 = vpop.permute.xlu1 %442 }
 0x2ce   : > { %v452_v23 = vmul.f32 %v443_v22, %v618_v0  ;;  %v453_v24 = vmul.f32 %v443_v22, %v620_v1 }
 0x2d0   : > { %460 = vst [vmem:[%s170_s30 + $0x20] sm:$0xff] %v452_v23  ;;  %461 = vst [vmem:[%s170_s30 + $0x28] sm:$0xff] %v453_v24 }
 0x2d1   : > { %v447_v25 = vpop.permute.xlu1 %446 }
 0x2d2   : > { %v454_v8 = vmul.f32 %v447_v25, %v628_v5  ;;  %v455_v9 = vmul.f32 %v447_v25, %v630_v6 }
 0x2d4   : > { %462 = vst [vmem:[%s170_s30 + $0x30] sm:$0xff] %v454_v8  ;;  %463 = vst [vmem:[%s170_s30 + $0x38] sm:$0xff] %v455_v9 }
 0x2d5 PF: > { %s13_s12 = sadd.s32 1, %s578_s12  }
 0x2d6   : > { %p10_p4 = scmp.ge.s32.totalorder %s13_s12, 4  }
 0x2d8   :  { %12 = sbr.rel (!%p10_p4) target bundleno = 1 (0x1), region = 62 }

</bundles_post_ra>
